<compile_context>
chip_gen: v7x
topology: tpu7x:2x2x1
jax: 0.10.0
libtpu: 0.0.40
codegen_flags: <defaults>
</compile_context>

<pallas_src>
import math

import jax
import jax.numpy as jnp
from jax.experimental import pallas as pl
from jax.experimental.pallas import tpu as pltpu


_INV_SQRT2 = 1.0 / math.sqrt(2.0)


def _gelu_exact(x):
    # Matches the PyTorch/BERT reference gelu: x * 0.5 * (1 + erf(x / sqrt(2))).
    # TODO(synk): jax.nn.gelu (tanh approx) would push the transcendental onto
    # the EUP slot, but changes numerics vs the exact-erf PyTorch GELU.
    return x * 0.5 * (1.0 + jax.lax.erf(x * _INV_SQRT2))


def ffn_kernel(x_ref, w1_ref, b1_ref, w2_ref, b2_ref, o_ref, acc_ref):
    # Grid: (row_tiles, ff_tiles). Axis 1 tiles dim_ff and is a reduction axis
    # for the second matmul -> accumulate into an f32 VMEM scratch.
    #   x_ref:  (tm, dim_p)      row tile (constant across k)
    #   w1_ref: (dim_p, tn_ff)   W1 column chunk
    #   b1_ref: (1, tn_ff)       b1 chunk
    #   w2_ref: (tn_ff, dim_p)   W2 row chunk
    #   b2_ref: (1, dim_p)       full b2
    #   acc_ref:(tm, dim_p) f32  accumulator
    k = pl.program_id(1)

    @pl.when(k == 0)
    def _():
        acc_ref[...] = jnp.zeros_like(acc_ref)

    # fc1 chunk + bias + exact GELU, all accumulated/evaluated in f32.
    h = jnp.dot(x_ref[...], w1_ref[...], preferred_element_type=jnp.float32)
    h = _gelu_exact(h + b1_ref[...])

    # fc2: add this dim_ff chunk's contribution (bf16 MXU path if weights are bf16).
    acc_ref[...] += jnp.dot(
        h.astype(w2_ref.dtype), w2_ref[...], preferred_element_type=jnp.float32
    )

    @pl.when(k == pl.num_programs(1) - 1)
    def _():
        o_ref[...] = (acc_ref[...] + b2_ref[...]).astype(o_ref.dtype)


def _round_up(x, m):
    return (x + m - 1) // m * m


def position_wise_ffn(
    x, w1, b1, w2, b2, *, tm=256, tn_ff=512, compute_dtype=None,
    vmem_limit_bytes=48 * 1024 * 1024,
):
    """out = fc2(gelu(fc1(x))).

    x: [B, S, dim]; w1: [dim, dim_ff]; b1: [dim_ff]; w2: [dim_ff, dim]; b2: [dim].
    compute_dtype: optionally cast x/W1/W2 (e.g. jnp.bfloat16) — accumulation,
    bias add and GELU stay in f32; output keeps x's original dtype.
    """
    B, S, dim = x.shape
    dim_ff = w1.shape[1]
    out_dtype = x.dtype

    b1 = jnp.asarray(b1, jnp.float32).reshape(1, dim_ff)
    b2 = jnp.asarray(b2, jnp.float32).reshape(1, dim)

    if compute_dtype is not None:
        x = x.astype(compute_dtype)
        w1 = w1.astype(compute_dtype)
        w2 = w2.astype(compute_dtype)

    M = B * S
    x2d = x.reshape(M, dim)

    # Lane-dense feature dims (multiples of 128); clamp/derive the dim_ff tile;
    # pad the row count to a tile multiple (no divisibility requirement on B*S).
    dim_p = _round_up(dim, 128)
    dim_ff_128 = _round_up(dim_ff, 128)
    tn_ff = min(tn_ff, dim_ff_128)
    dim_ff_p = _round_up(dim_ff, tn_ff)
    tm = min(tm, _round_up(M, 128))
    M_p = _round_up(M, tm)

    # Zero padding is exact: gelu(0) == 0, padded W2 rows/cols are zero.
    x2d = jnp.pad(x2d, ((0, M_p - M), (0, dim_p - dim)))
    w1p = jnp.pad(w1, ((0, dim_p - dim), (0, dim_ff_p - dim_ff)))
    b1p = jnp.pad(b1, ((0, 0), (0, dim_ff_p - dim_ff)))
    w2p = jnp.pad(w2, ((0, dim_ff_p - dim_ff), (0, dim_p - dim)))
    b2p = jnp.pad(b2, ((0, 0), (0, dim_p - dim)))

    grid = (M_p // tm, dim_ff_p // tn_ff)

    out = pl.pallas_call(
        ffn_kernel,
        out_shape=jax.ShapeDtypeStruct((M_p, dim_p), out_dtype),
        grid_spec=pltpu.PrefetchScalarGridSpec(
            num_scalar_prefetch=0,
            grid=grid,
            in_specs=[
                pl.BlockSpec((tm, dim_p), lambda i, k: (i, 0)),      # x rows
                pl.BlockSpec((dim_p, tn_ff), lambda i, k: (0, k)),   # W1 chunk
                pl.BlockSpec((1, tn_ff), lambda i, k: (0, k)),       # b1 chunk
                pl.BlockSpec((tn_ff, dim_p), lambda i, k: (k, 0)),   # W2 chunk
                pl.BlockSpec((1, dim_p), lambda i, k: (0, 0)),       # b2
            ],
            out_specs=pl.BlockSpec((tm, dim_p), lambda i, k: (i, 0)),
            scratch_shapes=[pltpu.VMEM((tm, dim_p), jnp.float32)],
        ),
        compiler_params=pltpu.CompilerParams(
            dimension_semantics=("parallel", "arbitrary"),
            vmem_limit_bytes=vmem_limit_bytes,
        ),
    )(x2d, w1p, b1p, w2p, b2p)

    return out[:M, :dim].reshape(B, S, dim)


def reference_ffn(x, w1, b1, w2, b2):
    x = x.astype(jnp.float32)
    h = _gelu_exact(jnp.einsum("bsd,df->bsf", x, w1.astype(jnp.float32)) + b1)
    return jnp.einsum("bsf,fd->bsd", h, w2.astype(jnp.float32)) + b2


if __name__ == "__main__":
    # cfg.dim = 32, cfg.dim_ff = 64, batch = 2, seq = 8
    B, S, dim, dim_ff = 2, 8, 32, 64

    key = jax.random.PRNGKey(0)
    kx, kw1, kb1, kw2, kb2 = jax.random.split(key, 5)

    x = jax.random.normal(kx, (B, S, dim), dtype=jnp.float32)

    # Deterministic "Linear-like" init (uniform in +/- 1/sqrt(fan_in)),
    # stored pre-transposed: W1 [dim, dim_ff], W2 [dim_ff, dim].
    lim1 = 1.0 / math.sqrt(dim)
    lim2 = 1.0 / math.sqrt(dim_ff)
    w1 = jax.random.uniform(kw1, (dim, dim_ff), jnp.float32, -lim1, lim1)
    b1 = jax.random.uniform(kb1, (dim_ff,), jnp.float32, -lim1, lim1)
    w2 = jax.random.uniform(kw2, (dim_ff, dim), jnp.float32, -lim2, lim2)
    b2 = jax.random.uniform(kb2, (dim,), jnp.float32, -lim2, lim2)

    ref = reference_ffn(x, w1, b1, w2, b2)

    # f32 path — matches the exact-erf PyTorch GELU reference tightly.
    out_f32 = jax.block_until_ready(position_wise_ffn(x, w1, b1, w2, b2))
    assert out_f32.shape == (B, S, dim)
    assert jnp.allclose(out_f32, ref, atol=1e-5, rtol=1e-5), "f32 mismatch vs reference"

    # bf16 compute path (recommended on v6e/v7x): bf16 MXU matmuls, f32
    # accumulation / bias / GELU. Looser tolerance vs the f32 reference.
    out_bf16 = jax.block_until_ready(
        position_wise_ffn(x, w1, b1, w2, b2, compute_dtype=jnp.bfloat16)
    )
    assert out_bf16.shape == (B, S, dim)
    assert jnp.allclose(out_bf16, ref, atol=5e-2, rtol=5e-2), "bf16 mismatch vs reference"

    print("KERNEL_OK")
</pallas_src>

<mosaic_0001>
module attributes {stable_mosaic.version = 11 : i64} {
  func.func @ffn_kernel(%arg0: i32, %arg1: i32, %arg2: memref<128x128xf32, #tpu.memory_space<vmem>>, %arg3: memref<128x128xf32, #tpu.memory_space<vmem>>, %arg4: memref<1x128xf32, #tpu.memory_space<vmem>>, %arg5: memref<128x128xf32, #tpu.memory_space<vmem>>, %arg6: memref<1x128xf32, #tpu.memory_space<vmem>>, %arg7: memref<128x128xf32, #tpu.memory_space<vmem>>, %arg8: memref<128x128xf32, #tpu.memory_space<vmem>>) attributes {dimension_semantics = [#tpu.dimension_semantics<parallel>, #tpu.dimension_semantics<arbitrary>], iteration_bounds = array<i64: 1, 1>, scalar_prefetch = 0 : i64, scratch_operands = 1 : i64, tpu.core_type = #tpu.core_type<tc>, window_params = [{transform_indices = @transform_0, window_bounds = array<i64: 128, 128>}, {transform_indices = @transform_1, window_bounds = array<i64: 128, 128>}, {transform_indices = @transform_2, window_bounds = array<i64: 1, 128>}, {transform_indices = @transform_3, window_bounds = array<i64: 128, 128>}, {pipeline_mode = #tpu.pipeline_mode<synchronous>, transform_indices = @transform_4, window_bounds = array<i64: 1, 128>}, {transform_indices = @transform_5, window_bounds = array<i64: 128, 128>}]} {
    %c0_i32 = arith.constant 0 : i32
    %0 = arith.cmpi eq, %arg1, %c0_i32 : i32
    %1 = arith.extui %0 : i1 to i32
    %c0_i32_0 = arith.constant 0 : i32
    %2 = arith.cmpi ne, %1, %c0_i32_0 : i32
    scf.if %2 {
      %cst_18 = arith.constant 0.000000e+00 : f32
      %25 = vector.broadcast %cst_18 : f32 to vector<128x128xf32>
      %c0_19 = arith.constant 0 : index
      %c0_20 = arith.constant 0 : index
      %26 = vector.load %arg8[%c0_19, %c0_20] : memref<128x128xf32, #tpu.memory_space<vmem>>, vector<128x128xf32>
      tpu.vector_store %arg8[%c0_19, %c0_20], %25 {strides = array<i32>} : memref<128x128xf32, #tpu.memory_space<vmem>>, vector<128x128xf32>,
    } else {
    }
    %c0 = arith.constant 0 : index
    %c0_1 = arith.constant 0 : index
    %3 = vector.load %arg2[%c0, %c0_1] : memref<128x128xf32, #tpu.memory_space<vmem>>, vector<128x128xf32>
    %c0_2 = arith.constant 0 : index
    %c0_3 = arith.constant 0 : index
    %4 = vector.load %arg3[%c0_2, %c0_3] : memref<128x128xf32, #tpu.memory_space<vmem>>, vector<128x128xf32>
    %cst = arith.constant dense<0.000000e+00> : vector<128x128xf32>
    %5 = tpu.matmul %3, %4, %cst {dimension_numbers = #tpu.dot_dimension_numbers<[1], [0], [0], [1], [0, 0, 1, 1], [], []>} : vector<128x128xf32>, vector<128x128xf32>, vector<128x128xf32> -> vector<128x128xf32>
    %c0_4 = arith.constant 0 : index
    %c0_5 = arith.constant 0 : index
    %6 = vector.load %arg4[%c0_4, %c0_5] : memref<1x128xf32, #tpu.memory_space<vmem>>, vector<1x128xf32>
    %7 = vector.broadcast %6 : vector<1x128xf32> to vector<128x128xf32>
    %8 = arith.addf %5, %7 : vector<128x128xf32>
    %cst_6 = arith.constant 5.000000e-01 : f32
    %9 = vector.broadcast %cst_6 : f32 to vector<128x128xf32>
    %10 = arith.mulf %8, %9 : vector<128x128xf32>
    %cst_7 = arith.constant 0.707106769 : f32
    %11 = vector.broadcast %cst_7 : f32 to vector<128x128xf32>
    %12 = arith.mulf %8, %11 : vector<128x128xf32>
    %13 = math.erf %12 : vector<128x128xf32>
    %cst_8 = arith.constant 1.000000e+00 : f32
    %14 = vector.broadcast %cst_8 : f32 to vector<128x128xf32>
    %15 = arith.addf %14, %13 : vector<128x128xf32>
    %16 = arith.mulf %10, %15 : vector<128x128xf32>
    %c0_9 = arith.constant 0 : index
    %c0_10 = arith.constant 0 : index
    %17 = vector.load %arg8[%c0_9, %c0_10] : memref<128x128xf32, #tpu.memory_space<vmem>>, vector<128x128xf32>
    %c0_11 = arith.constant 0 : index
    %c0_12 = arith.constant 0 : index
    %18 = vector.load %arg5[%c0_11, %c0_12] : memref<128x128xf32, #tpu.memory_space<vmem>>, vector<128x128xf32>
    %cst_13 = arith.constant dense<0.000000e+00> : vector<128x128xf32>
    %19 = tpu.matmul %16, %18, %cst_13 {dimension_numbers = #tpu.dot_dimension_numbers<[1], [0], [0], [1], [0, 0, 1, 1], [], []>} : vector<128x128xf32>, vector<128x128xf32>, vector<128x128xf32> -> vector<128x128xf32>
    %20 = arith.addf %17, %19 : vector<128x128xf32>
    %c0_14 = arith.constant 0 : index
    %c0_15 = arith.constant 0 : index
    %21 = vector.load %arg8[%c0_14, %c0_15] : memref<128x128xf32, #tpu.memory_space<vmem>>, vector<128x128xf32>
    tpu.vector_store %arg8[%c0_14, %c0_15], %20 {strides = array<i32>} : memref<128x128xf32, #tpu.memory_space<vmem>>, vector<128x128xf32>,
    %c0_i32_16 = arith.constant 0 : i32
    %22 = arith.cmpi eq, %arg1, %c0_i32_16 : i32
    %23 = arith.extui %22 : i1 to i32
    %c0_i32_17 = arith.constant 0 : i32
    %24 = arith.cmpi ne, %23, %c0_i32_17 : i32
    scf.if %24 {
      %c0_18 = arith.constant 0 : index
      %c0_19 = arith.constant 0 : index
      %25 = vector.load %arg8[%c0_18, %c0_19] : memref<128x128xf32, #tpu.memory_space<vmem>>, vector<128x128xf32>
      %c0_20 = arith.constant 0 : index
      %c0_21 = arith.constant 0 : index
      %26 = vector.load %arg6[%c0_20, %c0_21] : memref<1x128xf32, #tpu.memory_space<vmem>>, vector<1x128xf32>
      %27 = vector.broadcast %26 : vector<1x128xf32> to vector<128x128xf32>
      %28 = arith.addf %25, %27 : vector<128x128xf32>
      %c0_22 = arith.constant 0 : index
      %c0_23 = arith.constant 0 : index
      %29 = vector.load %arg7[%c0_22, %c0_23] : memref<128x128xf32, #tpu.memory_space<vmem>>, vector<128x128xf32>
      tpu.vector_store %arg7[%c0_22, %c0_23], %28 {strides = array<i32>} : memref<128x128xf32, #tpu.memory_space<vmem>>, vector<128x128xf32>,
    } else {
    }
    return
  }
  func.func @transform_0(%arg0: i32, %arg1: i32) -> (i32, i32) {
    %c0_i32 = arith.constant 0 : i32
    %c0_i32_0 = arith.constant 0 : i32
    return %arg0, %c0_i32 : i32, i32
  }
  func.func @transform_1(%arg0: i32, %arg1: i32) -> (i32, i32) {
    %c0_i32 = arith.constant 0 : i32
    %c0_i32_0 = arith.constant 0 : i32
    return %c0_i32, %arg1 : i32, i32
  }
  func.func @transform_2(%arg0: i32, %arg1: i32) -> (i32, i32) {
    %c0_i32 = arith.constant 0 : i32
    %c0_i32_0 = arith.constant 0 : i32
    return %c0_i32, %arg1 : i32, i32
  }
  func.func @transform_3(%arg0: i32, %arg1: i32) -> (i32, i32) {
    %c0_i32 = arith.constant 0 : i32
    %c0_i32_0 = arith.constant 0 : i32
    return %arg1, %c0_i32 : i32, i32
  }
  func.func @transform_4(%arg0: i32, %arg1: i32) -> (i32, i32) {
    %c0_i32 = arith.constant 0 : i32
    %c0_i32_0 = arith.constant 0 : i32
    %c0_i32_1 = arith.constant 0 : i32
    return %c0_i32, %c0_i32_0 : i32, i32
  }
  func.func @transform_5(%arg0: i32, %arg1: i32) -> (i32, i32) {
    %c0_i32 = arith.constant 0 : i32
    %c0_i32_0 = arith.constant 0 : i32
    return %arg0, %c0_i32 : i32, i32
  }
}

</mosaic_0001>

<bundles_post_ra>
// kernel: tpu_custom_call.1
= control target key start
LH: loop header
LB: loop body
LE: loop exit
PB: predicated region body
PF: predicated region fallthrough
CT: control target
= control target key end

     0   :  { %10 = vsyncpa [#allocation4], 0  ;;  %s1144_s0 = inlined_call_operand.hbm [shape: f32[128,128], index: 0, kind: input, shape index: {}]   ;;  %s1145_s1 = inlined_call_operand.hbm [shape: f32[128,128], index: 1, kind: input, shape index: {}]   ;;  %s1146_s2 = inlined_call_operand.vmem [shape: f32[1,128], index: 2, kind: input, shape index: {}]   ;;  %s1147_s3 = inlined_call_operand.hbm [shape: f32[128,128], index: 3, kind: input, shape index: {}]   ;;  %s1148_s4 = inlined_call_operand.vmem [shape: f32[1,128], index: 4, kind: input, shape index: {}]   ;;  %s1149_s5 = inlined_call_operand.hbm [shape: f32[128,128], index: 5, kind: output, shape index: {}]  }
   0x1   :  { %11 = vsyncpa [#allocation7], 0 }
   0x2   :  { %12 = vsyncpa [#allocation5], 0  ;;  %s1005_s18 = smov [#allocation6]   ;;  %s1006_s20 = smov [#allocation3]  }
   0x3   :  { %s30_s19 = sshll.u32 %s1005_s18, 4  ;;  %s18_s21 = sshll.u32 %s1006_s20, 4  ;;  %s31_s19 = int_to_ptr.vmem [resolvable:$true] %s30_s19  ;;  %s1041_s21 = int_to_ptr.vmem [resolvable:$true] %s18_s21 }
   0x4   :  { %s911_s24 = scalar_lea.hbm %s1145_s1, 2048 }
   0x5   :  { %p912_p0 = scmp.ne.s32.totalorder %s1145_s1, %s911_s24  ;;  %p915_p1 = scmp.lt.u32.totalorder %s911_s24, %s1145_s1 }
   0x7   :  { %p917_p2 = pnand %p915_p1, %p912_p0 }
   0x9   :  { %920 = shalt.err (!%p917_p2)
}
   0xa   :  { %s921_s29 = scalar_lea.vmem %s31_s19, 2048  ;;  %p926_p4 = scmp.lt.s32.totalorder %s31_s19, %s31_s19 }
   0xb   :  { %p922_p3 = scmp.ne.s32.totalorder %s31_s19, %s921_s29  ;;  %p927_p5 = scmp.lt.s32.totalorder %s921_s29, %s921_s29 }
   0xd   :  { %p928_p6 = por %p927_p5, %p926_p4 }
   0xf   :  { %p929_p7 = pnand %p928_p6, %p922_p3 }
  0x11   :  { %932 = shalt.err (!%p929_p7)
}
  0x12   :  { %s1007_s30 = smov 128   ;;  %s1008_s6 = smov 8  }
  0x13   :  { %36 = dma.hbm_to_vmem [thread:$0]  %s1145_s1, 2048, %s31_s19, [#allocation7], %s1007_s30, %s1007_s30, %s1008_s6  }
  0x14   :  { %s933_s11 = scalar_lea.hbm %s1144_s0, 2048 }
  0x15   :  { %p934_p8 = scmp.ne.s32.totalorder %s1144_s0, %s933_s11  ;;  %p937_p9 = scmp.lt.u32.totalorder %s933_s11, %s1144_s0 }
  0x17   :  { %p939_p10 = pnand %p937_p9, %p934_p8 }
  0x19   :  { %942 = shalt.err (!%p939_p10)
}
  0x1a   :  { %s943_s16 = scalar_lea.vmem %s1041_s21, 2048  ;;  %p948_p12 = scmp.lt.s32.totalorder %s1041_s21, %s1041_s21 }
  0x1b   :  { %p944_p11 = scmp.ne.s32.totalorder %s1041_s21, %s943_s16  ;;  %p949_p13 = scmp.lt.s32.totalorder %s943_s16, %s943_s16 }
  0x1d   :  { %p950_p0 = por %p949_p13, %p948_p12 }
  0x1f   :  { %p951_p1 = pnand %p950_p0, %p944_p11 }
  0x21   :  { %954 = shalt.err (!%p951_p1)
}
  0x22   :  { %24 = dma.hbm_to_vmem [thread:$0]  %s1144_s0, 2048, %s1041_s21, [#allocation4], %s1007_s30, %s1007_s30, %s1008_s6  }
  0x23   :  { %s1009_s18 = smov [#allocation8]   ;;  %s955_s23 = scalar_lea.hbm %s1147_s3, 2048 }
  0x24   :  { %s44_s19 = sshll.u32 %s1009_s18, 4  ;;  %p956_p2 = scmp.ne.s32.totalorder %s1147_s3, %s955_s23  ;;  %s45_s19 = int_to_ptr.vmem [resolvable:$true] %s44_s19 }
  0x25   :  { %p959_p3 = scmp.lt.u32.totalorder %s955_s23, %s1147_s3 }
  0x27   :  { %p961_p4 = pnand %p959_p3, %p956_p2 }
  0x29   :  { %964 = shalt.err (!%p961_p4)
}
  0x2a   :  { %s965_s28 = scalar_lea.vmem %s45_s19, 2048  ;;  %p970_p6 = scmp.lt.s32.totalorder %s45_s19, %s45_s19 }
  0x2b   :  { %p966_p5 = scmp.ne.s32.totalorder %s45_s19, %s965_s28  ;;  %p971_p7 = scmp.lt.s32.totalorder %s965_s28, %s965_s28 }
  0x2d   :  { %p972_p8 = por %p971_p7, %p970_p6 }
  0x2f   :  { %p973_p9 = pnand %p972_p8, %p966_p5 }
  0x31   :  { %976 = shalt.err (!%p973_p9)
}
  0x32   :  { %50 = dma.hbm_to_vmem [thread:$0]  %s1147_s3, 2048, %s45_s19, [#allocation7], %s1007_s30, %s1007_s30, %s1008_s6  }
  0x33   :  { %999 = dma.done.wait [#allocation4], 2048  }
  0x34   :  { %1000 = vsyncadd [#allocation4], 4294965248 }
  0x35   :  { %1001 = dma.done.wait [#allocation7], 4096  }
  0x36   :  { %1002 = vsyncadd [#allocation7], 4294963200  ;;  %v98_v0 = vld [vmem:[#allocation6] sm:$0xff]  ;;  %v99_v1 = vld [vmem:[#allocation6 + $0x8] sm:$0xff] }
  0x37   :  { %v100_v2 = vld [vmem:[#allocation6 + $0x10] sm:$0xff]  ;;  %v809_v3 = vpack.c.bf16 %v99_v1, %v98_v0  ;;  %v101_v4 = vld [vmem:[#allocation6 + $0x18] sm:$0xff]  ;;  %v102_v6 = vld [vmem:[#allocation6 + $0x20] sm:$0xff] }
  0x38   :  { %v813_v5 = vpack.c.bf16 %v101_v4, %v100_v2  ;;  %v103_v7 = vld [vmem:[#allocation6 + $0x28] sm:$0xff]  ;;  %v82_v9 = vld [vmem:[#allocation3] sm:$0xff]  ;;  %v104_v10 = vld [vmem:[#allocation6 + $0x30] sm:$0xff] }
  0x39   :  { %810 = vmatprep.subr.bf16.mxu0 %v809_v3  ;;  %v817_v8 = vpack.c.bf16 %v103_v7, %v102_v6  ;;  %v105_v11 = vld [vmem:[#allocation6 + $0x38] sm:$0xff]  ;;  %729 = vmatprep.mubr.f32.mxu0 %v82_v9  ;;  %v106_v13 = vld [vmem:[#allocation6 + $0x40] sm:$0xff]  ;;  %v107_v14 = vld [vmem:[#allocation6 + $0x48] sm:$0xff] }
  0x3a   :  { %812 = vmatpush3.bf16.msra.mxu0 %v809_v3  ;;  %v821_v12 = vpack.c.bf16 %v105_v11, %v104_v10  ;;  %v362_v15 = vld [vmem:[#allocation8] sm:$0xff]  ;;  %v363_v16 = vld [vmem:[#allocation8 + $0x8] sm:$0xff]  ;;  %v364_v17 = vld [vmem:[#allocation8 + $0x10] sm:$0xff]  ;;  %v825_v21 = vpack.c.bf16 %v107_v14, %v106_v13 }
  0x3b   :  { %814 = vmatprep.subr.bf16.mxu0 %v813_v5  ;;  %v365_v18 = vld [vmem:[#allocation8 + $0x18] sm:$0xff]  ;;  %v841_v19 = vpack.c.bf16 %v363_v16, %v362_v15  ;;  %v366_v22 = vld [vmem:[#allocation8 + $0x20] sm:$0xff]  ;;  %v367_v23 = vld [vmem:[#allocation8 + $0x28] sm:$0xff] }
  0x3c   :  { %v845_v20 = vpack.c.bf16 %v365_v18, %v364_v17  ;;  %v108_v24 = vld [vmem:[#allocation6 + $0x50] sm:$0xff]  ;;  %v109_v25 = vld [vmem:[#allocation6 + $0x58] sm:$0xff]  ;;  %v849_v26 = vpack.c.bf16 %v367_v23, %v366_v22  ;;  %v110_v28 = vld [vmem:[#allocation6 + $0x60] sm:$0xff] }
  0x3d   :  { %842 = vmatprep.subr.bf16.mxu1 %v841_v19  ;;  %v829_v27 = vpack.c.bf16 %v109_v25, %v108_v24  ;;  %v111_v29 = vld [vmem:[#allocation6 + $0x68] sm:$0xff]  ;;  %v112_v31 = vld [vmem:[#allocation6 + $0x70] sm:$0xff]  ;;  %v113_v32 = vld [vmem:[#allocation6 + $0x78] sm:$0xff] }
  0x3e   :  { %816 = vmatpush3.bf16.msra.mxu0 %v813_v5  ;;  %844 = vmatpush3.bf16.msra.mxu1 %v841_v19  ;;  %v833_v30 = vpack.c.bf16 %v111_v29, %v110_v28  ;;  %v837_v33 = vpack.c.bf16 %v113_v32, %v112_v31  ;;  %v83_v34 = vld [vmem:[#allocation3 + $0x8] sm:$0xff]  ;;  %v84_v35 = vld [vmem:[#allocation3 + $0x10] sm:$0xff]  ;;  %v85_v36 = vld [vmem:[#allocation3 + $0x18] sm:$0xff] }
  0x3f   :  { %818 = vmatprep.subr.bf16.mxu0 %v817_v8  ;;  %846 = vmatprep.subr.bf16.mxu1 %v845_v20  ;;  %v86_v37 = vld [vmem:[#allocation3 + $0x20] sm:$0xff]  ;;  %v87_v38 = vld [vmem:[#allocation3 + $0x28] sm:$0xff]  ;;  %v88_v39 = vld [vmem:[#allocation3 + $0x30] sm:$0xff] }
  0x40   :  { %v89_v40 = vld [vmem:[#allocation3 + $0x38] sm:$0xff]  ;;  %v90_v41 = vld [vmem:[#allocation3 + $0x40] sm:$0xff]  ;;  %v91_v42 = vld [vmem:[#allocation3 + $0x48] sm:$0xff] }
  0x41   :  { %v92_v43 = vld [vmem:[#allocation3 + $0x50] sm:$0xff]  ;;  %v93_v44 = vld [vmem:[#allocation3 + $0x58] sm:$0xff]  ;;  %v94_v45 = vld [vmem:[#allocation3 + $0x60] sm:$0xff] }
  0x42   :  { %820 = vmatpush3.bf16.msra.mxu0 %v817_v8  ;;  %848 = vmatpush3.bf16.msra.mxu1 %v845_v20  ;;  %v95_v46 = vld [vmem:[#allocation3 + $0x68] sm:$0xff]  ;;  %v96_v47 = vld [vmem:[#allocation3 + $0x70] sm:$0xff]  ;;  %v97_v48 = vld [vmem:[#allocation3 + $0x78] sm:$0xff] }
  0x43   :  { %822 = vmatprep.subr.bf16.mxu0 %v821_v12  ;;  %850 = vmatprep.subr.bf16.mxu1 %v849_v26  ;;  %v368_v49 = vld [vmem:[#allocation8 + $0x30] sm:$0xff]  ;;  %v369_v50 = vld [vmem:[#allocation8 + $0x38] sm:$0xff]  ;;  %v370_v52 = vld [vmem:[#allocation8 + $0x40] sm:$0xff] }
  0x44   :  { %v853_v51 = vpack.c.bf16 %v369_v50, %v368_v49  ;;  %v371_v53 = vld [vmem:[#allocation8 + $0x48] sm:$0xff]  ;;  %v372_v55 = vld [vmem:[#allocation8 + $0x50] sm:$0xff]  ;;  %v373_v56 = vld [vmem:[#allocation8 + $0x58] sm:$0xff] }
  0x45   :  { %v857_v54 = vpack.c.bf16 %v371_v53, %v370_v52  ;;  %v861_v57 = vpack.c.bf16 %v373_v56, %v372_v55  ;;  %v374_v58 = vld [vmem:[#allocation8 + $0x60] sm:$0xff]  ;;  %v375_v59 = vld [vmem:[#allocation8 + $0x68] sm:$0xff]  ;;  %v376_v61 = vld [vmem:[#allocation8 + $0x70] sm:$0xff] }
  0x46   :  { %824 = vmatpush3.bf16.msra.mxu0 %v821_v12  ;;  %852 = vmatpush3.bf16.msra.mxu1 %v849_v26  ;;  %v865_v60 = vpack.c.bf16 %v375_v59, %v374_v58  ;;  %v377_v62 = vld [vmem:[#allocation8 + $0x78] sm:$0xff]  ;;  %v1096_v0 = vld [vmem:[%s1146_s2] ss:$0 sm:$0xff] }
  0x47   :  { %826 = vmatprep.subr.bf16.mxu0 %v825_v21  ;;  %854 = vmatprep.subr.bf16.mxu1 %v853_v51  ;;  %v869_v63 = vpack.c.bf16 %v377_v62, %v376_v61 }
  0x4a   :  { %828 = vmatpush3.bf16.msra.mxu0 %v825_v21  ;;  %856 = vmatpush3.bf16.msra.mxu1 %v853_v51 }
  0x4b   :  { %830 = vmatprep.subr.bf16.mxu0 %v829_v27  ;;  %858 = vmatprep.subr.bf16.mxu1 %v857_v54 }
  0x4e   :  { %832 = vmatpush3.bf16.msra.mxu0 %v829_v27  ;;  %860 = vmatpush3.bf16.msra.mxu1 %v857_v54 }
  0x4f   :  { %834 = vmatprep.subr.bf16.mxu0 %v833_v30  ;;  %862 = vmatprep.subr.bf16.mxu1 %v861_v57 }
  0x52   :  { %836 = vmatpush3.bf16.msra.mxu0 %v833_v30  ;;  %864 = vmatpush3.bf16.msra.mxu1 %v861_v57 }
  0x53   :  { %838 = vmatprep.subr.bf16.mxu0 %v837_v33  ;;  %866 = vmatprep.subr.bf16.mxu1 %v865_v60 }
  0x56   :  { %840 = vmatpush3.bf16.msra.mxu0 %v837_v33  ;;  %868 = vmatpush3.bf16.msra.mxu1 %v865_v60 }
  0x57   :  { %870 = vmatprep.subr.bf16.mxu1 %v869_v63 }
  0x59   :  { %730 = vmatmul.mubr.f32.vlgmr.msra.gmra.mrb[0].mxu0 %v83_v34 }
  0x5a   :  { %732 = vmatprep.mubr.f32.mxu0 %v84_v35  ;;  %872 = vmatpush3.bf16.msra.mxu1 %v869_v63 }
  0x5d   :  { %733 = vmatmul.mubr.f32.gmra.mrb[2].mxu0 %v85_v36 }
  0x5e   :  { %735 = vmatprep.mubr.f32.mxu0 %v86_v37 }
  0x61   :  { %736 = vmatmul.mubr.f32.gmra.mrb[4].mxu0 %v87_v38 }
  0x62   :  { %738 = vmatprep.mubr.f32.mxu0 %v88_v39 }
  0x65   :  { %739 = vmatmul.mubr.f32.gmra.mrb[6].mxu0 %v89_v40 }
  0x66   :  { %741 = vmatprep.mubr.f32.mxu0 %v90_v41 }
  0x69   :  { %742 = vmatmul.mubr.f32.gmra.mrb[8].mxu0 %v91_v42 }
  0x6a   :  { %744 = vmatprep.mubr.f32.mxu0 %v92_v43 }
  0x6d   :  { %745 = vmatmul.mubr.f32.gmra.mrb[10].mxu0 %v93_v44 }
  0x6e   :  { %747 = vmatprep.mubr.f32.mxu0 %v94_v45 }
  0x71   :  { %748 = vmatmul.mubr.f32.gmra.mrb[12].mxu0 %v95_v46 }
  0x72   :  { %750 = vmatprep.mubr.f32.mxu0 %v96_v47 }
  0x75   :  { %751 = vmatmul.mubr.f32.gmra.mrb[14].mxu0 %v97_v48 }
 0x12c   :  { %v731_v1 = vpop.f32.mrb[0].mxu0 }
 0x12d   :  { %v193_v2 = vadd.f32 %v731_v1, %v1096_v0  ;;  %v187_v3 = vpop.f32.mrb[1].mxu0 }
 0x12e   :  { %v188_v4 = vadd.f32 %v1096_v0, %v187_v3 }
 0x12f   :  { %v283_v5 = vmul.f32 0.70710677, %v193_v2  ;;  %v267_v33 = vmul.f32 0.5, %v193_v2 }
 0x130   :  { %v282_v6 = vmul.f32 0.70710677, %v188_v4  ;;  %v734_v7 = vpop.f32.mrb[2].mxu0  ;;  %v266_v31 = vmul.f32 0.5, %v188_v4 }
 0x131   :  { %879 = verf.f32 %v283_v5  ;;  %v203_v8 = vadd.f32 %v734_v7, %v1096_v0  ;;  %v197_v9 = vpop.f32.mrb[3].mxu0 }
 0x132   :  { %881 = verf.f32 %v282_v6  ;;  %v198_v10 = vadd.f32 %v1096_v0, %v197_v9 }
 0x133   :  { %v285_v11 = vmul.f32 0.70710677, %v203_v8  ;;  %v269_v47 = vmul.f32 0.5, %v203_v8 }
 0x134   :  { %v284_v12 = vmul.f32 0.70710677, %v198_v10  ;;  %v737_v13 = vpop.f32.mrb[4].mxu0  ;;  %v268_v43 = vmul.f32 0.5, %v198_v10 }
 0x135   :  { %883 = verf.f32 %v285_v11  ;;  %v213_v14 = vadd.f32 %v737_v13, %v1096_v0  ;;  %v207_v15 = vpop.f32.mrb[5].mxu0 }
 0x136   :  { %885 = verf.f32 %v284_v12  ;;  %v208_v16 = vadd.f32 %v1096_v0, %v207_v15 }
 0x137   :  { %v287_v17 = vmul.f32 0.70710677, %v213_v14  ;;  %v271_v61 = vmul.f32 0.5, %v213_v14 }
 0x138   :  { %v286_v18 = vmul.f32 0.70710677, %v208_v16  ;;  %v740_v19 = vpop.f32.mrb[6].mxu0  ;;  %v270_v57 = vmul.f32 0.5, %v208_v16 }
 0x139   :  { %887 = verf.f32 %v287_v17  ;;  %v1105_v20 = vadd.f32 %v740_v19, %v1096_v0  ;;  %v217_v21 = vpop.f32.mrb[7].mxu0 }
 0x13a   :  { %889 = verf.f32 %v286_v18  ;;  %v218_v22 = vadd.f32 %v1096_v0, %v217_v21 }
 0x13b   :  { %v880_v23 = vpop.eup %879  ;;  %v289_v24 = vmul.f32 0.70710677, %v1105_v20  ;;  %v273_v12 = vmul.f32 0.5, %v1105_v20 }
 0x13c   :  { %v882_v25 = vpop.eup %881  ;;  %v315_v26 = vadd.f32 1.0, %v880_v23  ;;  %v288_v27 = vmul.f32 0.70710677, %v218_v22  ;;  %v743_v28 = vpop.f32.mrb[8].mxu0  ;;  %v272_v8 = vmul.f32 0.5, %v218_v22 }
 0x13d   :  { %891 = verf.f32 %v289_v24  ;;  %v1110_v29 = vadd.f32 %v743_v28, %v1096_v0  ;;  %v227_v30 = vpop.f32.mrb[9].mxu0  ;;  %v314_v32 = vadd.f32 1.0, %v882_v25 }
 0x13e   :  { %893 = verf.f32 %v288_v27  ;;  %v228_v34 = vadd.f32 %v1096_v0, %v227_v30  ;;  %v331_v42 = vmul.f32 %v315_v26, %v267_v33 }
 0x13f   :  { %v884_v35 = vpop.eup %883  ;;  %v291_v36 = vmul.f32 0.70710677, %v1110_v29  ;;  %v330_v37 = vmul.f32 %v314_v32, %v266_v31  ;;  %v275_v24 = vmul.f32 0.5, %v1110_v29 }
 0x140   :  { %v886_v38 = vpop.eup %885  ;;  %v317_v39 = vadd.f32 1.0, %v884_v35  ;;  %v290_v40 = vmul.f32 0.70710677, %v228_v34  ;;  %v746_v41 = vpop.f32.mrb[10].mxu0  ;;  %v274_v22 = vmul.f32 0.5, %v228_v34 }
 0x141   :  { %v316_v44 = vadd.f32 1.0, %v886_v38  ;;  %895 = verf.f32 %v291_v36  ;;  %v1115_v45 = vadd.f32 %v746_v41, %v1096_v0  ;;  %v237_v46 = vpop.f32.mrb[11].mxu0  ;;  %785 = vmatprep.mubr.f32.mxu1 %v330_v37 }
 0x142   :  { %897 = verf.f32 %v290_v40  ;;  %v238_v48 = vadd.f32 %v1096_v0, %v237_v46  ;;  %786 = vmatmul.mubr.f32.vlgmr.msra.gmra.mrb[0].mxu1 %v331_v42  ;;  %v333_v56 = vmul.f32 %v317_v39, %v269_v47 }
 0x143   :  { %v888_v49 = vpop.eup %887  ;;  %v293_v50 = vmul.f32 0.70710677, %v1115_v45  ;;  %v332_v51 = vmul.f32 %v316_v44, %v268_v43  ;;  %v277_v31 = vmul.f32 0.5, %v1115_v45 }
 0x144   :  { %v890_v52 = vpop.eup %889  ;;  %v319_v53 = vadd.f32 1.0, %v888_v49  ;;  %v292_v54 = vmul.f32 0.70710677, %v238_v48  ;;  %v749_v55 = vpop.f32.mrb[12].mxu0  ;;  %v276_v28 = vmul.f32 0.5, %v238_v48 }
 0x145   :  { %v318_v58 = vadd.f32 1.0, %v890_v52  ;;  %899 = verf.f32 %v293_v50  ;;  %v253_v59 = vadd.f32 %v749_v55, %v1096_v0  ;;  %v247_v60 = vpop.f32.mrb[13].mxu0  ;;  %788 = vmatprep.mubr.f32.mxu1 %v332_v51  ;;  %v632_v49 = vld [vmem:[%s1148_s4] ss:$0 sm:$0xff]  ;;  %s1010_s4 = smov [#allocation9]  }
 0x146   :  { %901 = verf.f32 %v292_v54  ;;  %v248_v62 = vadd.f32 %v1096_v0, %v247_v60  ;;  %789 = vmatmul.mubr.f32.gmra.mrb[2].mxu1 %v333_v56  ;;  %v335_v7 = vmul.f32 %v319_v53, %v271_v61  ;;  %s618_s8 = sshll.u32 %s1010_s4, 4  ;;  %s619_s8 = int_to_ptr.vmem [resolvable:$true] %s618_s8 }
 0x147   :  { %v892_v63 = vpop.eup %891  ;;  %v295_v1 = vmul.f32 0.70710677, %v253_v59  ;;  %v334_v2 = vmul.f32 %v318_v58, %v270_v57  ;;  %v279_v38 = vmul.f32 0.5, %v253_v59  ;;  %s977_s9 = scalar_lea.vmem %s619_s8, 2048  ;;  %p982_p11 = scmp.lt.s32.totalorder %s619_s8, %s619_s8 }
 0x148   :  { %v894_v3 = vpop.eup %893  ;;  %v321_v4 = vadd.f32 1.0, %v892_v63  ;;  %v294_v5 = vmul.f32 0.70710677, %v248_v62  ;;  %v752_v6 = vpop.f32.mrb[14].mxu0  ;;  %v278_v37 = vmul.f32 0.5, %v248_v62  ;;  %p978_p10 = scmp.ne.s32.totalorder %s619_s8, %s977_s9  ;;  %p983_p12 = scmp.lt.s32.totalorder %s977_s9, %s977_s9 }
 0x149   :  { %v320_v9 = vadd.f32 1.0, %v894_v3  ;;  %903 = verf.f32 %v295_v1  ;;  %v263_v10 = vadd.f32 %v752_v6, %v1096_v0  ;;  %v257_v11 = vpop.f32.mrb[15].mxu0  ;;  %791 = vmatprep.mubr.f32.mxu1 %v334_v2 }
 0x14a   :  { %905 = verf.f32 %v294_v5  ;;  %v258_v13 = vadd.f32 %v1096_v0, %v257_v11  ;;  %792 = vmatmul.mubr.f32.gmra.mrb[4].mxu1 %v335_v7  ;;  %v337_v21 = vmul.f32 %v321_v4, %v273_v12  ;;  %p984_p13 = por %p983_p12, %p982_p11 }
 0x14b   :  { %v896_v14 = vpop.eup %895  ;;  %v297_v15 = vmul.f32 0.70710677, %v263_v10  ;;  %v336_v16 = vmul.f32 %v320_v9, %v272_v8  ;;  %v281_v45 = vmul.f32 0.5, %v263_v10 }
 0x14c   :  { %v898_v17 = vpop.eup %897  ;;  %v323_v18 = vadd.f32 1.0, %v896_v14  ;;  %v296_v19 = vmul.f32 0.70710677, %v258_v13  ;;  %v280_v44 = vmul.f32 0.5, %v258_v13  ;;  %p985_p0 = pnand %p984_p13, %p978_p10 }
 0x14d   :  { %v322_v23 = vadd.f32 1.0, %v898_v17  ;;  %907 = verf.f32 %v297_v15  ;;  %794 = vmatprep.mubr.f32.mxu1 %v336_v16 }
 0x14e   :  { %909 = verf.f32 %v296_v19  ;;  %795 = vmatmul.mubr.f32.gmra.mrb[6].mxu1 %v337_v21  ;;  %v339_v27 = vmul.f32 %v323_v18, %v275_v24 }
 0x14f   :  { %v900_v20 = vpop.eup %899  ;;  %v338_v25 = vmul.f32 %v322_v23, %v274_v22 }
 0x150   :  { %v902_v26 = vpop.eup %901  ;;  %v325_v0 = vadd.f32 1.0, %v900_v20 }
 0x151   :  { %v324_v30 = vadd.f32 1.0, %v902_v26  ;;  %797 = vmatprep.mubr.f32.mxu1 %v338_v25 }
 0x152   :  { %798 = vmatmul.mubr.f32.gmra.mrb[8].mxu1 %v339_v27  ;;  %v341_v36 = vmul.f32 %v325_v0, %v277_v31 }
 0x153   :  { %v904_v32 = vpop.eup %903  ;;  %v340_v33 = vmul.f32 %v324_v30, %v276_v28 }
 0x154   :  { %v906_v34 = vpop.eup %905  ;;  %v327_v35 = vadd.f32 1.0, %v904_v32 }
 0x155   :  { %v326_v29 = vadd.f32 1.0, %v906_v34  ;;  %800 = vmatprep.mubr.f32.mxu1 %v340_v33 }
 0x156   :  { %801 = vmatmul.mubr.f32.gmra.mrb[10].mxu1 %v341_v36  ;;  %v343_v43 = vmul.f32 %v327_v35, %v279_v38 }
 0x157   :  { %v908_v39 = vpop.eup %907  ;;  %v342_v40 = vmul.f32 %v326_v29, %v278_v37 }
 0x158   :  { %v910_v41 = vpop.eup %909  ;;  %v329_v42 = vadd.f32 1.0, %v908_v39 }
 0x159   :  { %v328_v46 = vadd.f32 1.0, %v910_v41  ;;  %803 = vmatprep.mubr.f32.mxu1 %v342_v40 }
 0x15a   :  { %804 = vmatmul.mubr.f32.gmra.mrb[12].mxu1 %v343_v43  ;;  %v345_v48 = vmul.f32 %v329_v42, %v281_v45 }
 0x15b   :  { %v344_v47 = vmul.f32 %v328_v46, %v280_v44 }
 0x15d   :  { %806 = vmatprep.mubr.f32.mxu1 %v344_v47 }
 0x15e   :  { %807 = vmatmul.mubr.f32.gmra.mrb[14].mxu1 %v345_v48 }
 0x215   :  { %v787_v50 = vpop.f32.mrb[0].mxu1 }
 0x216   :  { %v582_v51 = vadd.f32 %v787_v50, %v632_v49  ;;  %v444_v52 = vpop.f32.mrb[1].mxu1 }
 0x217   :  { %v581_v53 = vadd.f32 %v632_v49, %v444_v52 }
 0x218   :  { %598 = vst [vmem:[#allocation9 + $0x8] sm:$0xff] %v582_v51 }
 0x219   :  { %597 = vst [vmem:[#allocation9] sm:$0xff] %v581_v53  ;;  %v790_v54 = vpop.f32.mrb[2].mxu1 }
 0x21a   :  { %v584_v55 = vadd.f32 %v790_v54, %v632_v49  ;;  %v454_v56 = vpop.f32.mrb[3].mxu1 }
 0x21b   :  { %v583_v57 = vadd.f32 %v632_v49, %v454_v56 }
 0x21c   :  { %600 = vst [vmem:[#allocation9 + $0x18] sm:$0xff] %v584_v55 }
 0x21d   :  { %599 = vst [vmem:[#allocation9 + $0x10] sm:$0xff] %v583_v57  ;;  %v793_v58 = vpop.f32.mrb[4].mxu1 }
 0x21e   :  { %v586_v59 = vadd.f32 %v793_v58, %v632_v49  ;;  %v464_v60 = vpop.f32.mrb[5].mxu1 }
 0x21f   :  { %v585_v61 = vadd.f32 %v632_v49, %v464_v60 }
 0x220   :  { %602 = vst [vmem:[#allocation9 + $0x28] sm:$0xff] %v586_v59 }
 0x221   :  { %601 = vst [vmem:[#allocation9 + $0x20] sm:$0xff] %v585_v61  ;;  %v796_v62 = vpop.f32.mrb[6].mxu1 }
 0x222   :  { %v588_v63 = vadd.f32 %v796_v62, %v632_v49  ;;  %v474_v1 = vpop.f32.mrb[7].mxu1 }
 0x223   :  { %v587_v2 = vadd.f32 %v632_v49, %v474_v1 }
 0x224   :  { %604 = vst [vmem:[#allocation9 + $0x38] sm:$0xff] %v588_v63 }
 0x225   :  { %603 = vst [vmem:[#allocation9 + $0x30] sm:$0xff] %v587_v2  ;;  %v799_v3 = vpop.f32.mrb[8].mxu1 }
 0x226   :  { %v590_v4 = vadd.f32 %v799_v3, %v632_v49  ;;  %v484_v5 = vpop.f32.mrb[9].mxu1 }
 0x227   :  { %v589_v6 = vadd.f32 %v632_v49, %v484_v5 }
 0x228   :  { %606 = vst [vmem:[#allocation9 + $0x48] sm:$0xff] %v590_v4 }
 0x229   :  { %605 = vst [vmem:[#allocation9 + $0x40] sm:$0xff] %v589_v6  ;;  %v802_v7 = vpop.f32.mrb[10].mxu1 }
 0x22a   :  { %v592_v8 = vadd.f32 %v802_v7, %v632_v49  ;;  %v494_v9 = vpop.f32.mrb[11].mxu1 }
 0x22b   :  { %v591_v10 = vadd.f32 %v632_v49, %v494_v9 }
 0x22c   :  { %608 = vst [vmem:[#allocation9 + $0x58] sm:$0xff] %v592_v8 }
 0x22d   :  { %607 = vst [vmem:[#allocation9 + $0x50] sm:$0xff] %v591_v10  ;;  %v805_v11 = vpop.f32.mrb[12].mxu1 }
 0x22e   :  { %v594_v12 = vadd.f32 %v805_v11, %v632_v49  ;;  %v504_v13 = vpop.f32.mrb[13].mxu1 }
 0x22f   :  { %v593_v14 = vadd.f32 %v632_v49, %v504_v13 }
 0x230   :  { %610 = vst [vmem:[#allocation9 + $0x68] sm:$0xff] %v594_v12 }
 0x231   :  { %609 = vst [vmem:[#allocation9 + $0x60] sm:$0xff] %v593_v14  ;;  %v808_v15 = vpop.f32.mrb[14].mxu1 }
 0x232   :  { %v596_v16 = vadd.f32 %v808_v15, %v632_v49  ;;  %v514_v17 = vpop.f32.mrb[15].mxu1 }
 0x233   :  { %v595_v18 = vadd.f32 %v632_v49, %v514_v17 }
 0x234   :  { %612 = vst [vmem:[#allocation9 + $0x78] sm:$0xff] %v596_v16 }
 0x235   :  { %611 = vst [vmem:[#allocation9 + $0x70] sm:$0xff] %v595_v18 }
 0x236   :  { %988 = shalt.err (!%p985_p0)
}
 0x237   :  { %s989_s12 = scalar_lea.hbm %s1149_s5, 2048 }
 0x238   :  { %p990_p1 = scmp.ne.s32.totalorder %s1149_s5, %s989_s12  ;;  %p993_p2 = scmp.lt.u32.totalorder %s989_s12, %s1149_s5 }
 0x23a   :  { %p995_p3 = pnand %p993_p2, %p990_p1 }
 0x23c   :  { %998 = shalt.err (!%p995_p3)
}
 0x23d   :  { %624 = dma.vmem_to_hbm [thread:$0]  %s619_s8, 2048, %s1149_s5, [#allocation5], %s1007_s30, %s1007_s30, %s1008_s6  }
 0x23e   :  { %1003 = dma.done.wait [#allocation5], 2048  }
 0x23f   :  { %1004 = vsyncadd [#allocation5], 4294965248 }
 0x240   :  { %628 = vsyncpa [#allocation4], 1 }
 0x241   :  { %629 = vsyncpa [#allocation7], 1 }
 0x242   :  { %630 = vsyncpa [#allocation5], 1 }

</bundles_post_ra>
